<compile_context>
chip_gen: v7x
topology: tpu7x:2x2x1
jax: 0.10.0
libtpu: 0.0.40
codegen_flags: <defaults>
</compile_context>

<pallas_src>
import jax
import jax.numpy as jnp
from jax.experimental import pallas as pl
from jax.experimental.pallas import tpu as pltpu

BN_EPS = 1e-5

IN_FEATURES = 200
H1 = 256
H2 = 512
OUT_FEATURES = 200
PAD = 256          # lane-dense padding for the 200-wide dims
PVEC_W = 512       # width of the packed per-feature-vector array


def _bn_train_fused(h, gamma, beta):
    """Training-mode BatchNorm1d folded to one scale/shift per feature.

    var = E[h^2] - mean^2 (biased), scale = gamma * rsqrt(var + eps),
    shift = beta - mean * scale, result = h * scale + shift.
    """
    mean = jnp.mean(h, axis=0, keepdims=True)
    mean_sq = jnp.mean(h * h, axis=0, keepdims=True)
    var = mean_sq - mean * mean
    scale = gamma * jax.lax.rsqrt(var + BN_EPS)
    shift = beta - mean * scale
    return h * scale + shift


def _fine_text_embedding_kernel(x_ref, w1_ref, w2_ref, w3_ref, p_ref, o_ref):
    # Packed per-feature vectors (f32), rows:
    #   0: b1[:256]   1: g1[:256]   2: be1[:256]
    #   3: b2[:512]   4: g2[:512]   5: be2[:512]
    #   6: b3 (padded to 256)       7: unused padding row
    p = p_ref[...]
    b1, g1, be1 = p[0:1, :H1], p[1:2, :H1], p[2:3, :H1]
    b2, g2, be2 = p[3:4, :H2], p[4:5, :H2], p[5:6, :H2]
    b3 = p[6:7, :PAD]

    x = x_ref[...]                                              # (B, 256) bf16

    # Linear(200->256) + ReLU + BatchNorm1d(256)
    h1 = jnp.dot(x, w1_ref[...], preferred_element_type=jnp.float32) + b1
    h1 = jnp.maximum(h1, 0.0)
    h1 = _bn_train_fused(h1, g1, be1)                           # f32 (B, 256)

    # Linear(256->512) + ReLU + BatchNorm1d(512)
    h2 = jnp.dot(h1.astype(jnp.bfloat16), w2_ref[...],
                 preferred_element_type=jnp.float32) + b2
    h2 = jnp.maximum(h2, 0.0)
    h2 = _bn_train_fused(h2, g2, be2)                           # f32 (B, 512)

    # Linear(512->200), padded to 256 output lanes
    out = jnp.dot(h2.astype(jnp.bfloat16), w3_ref[...],
                  preferred_element_type=jnp.float32) + b3
    o_ref[...] = out.astype(o_ref.dtype)                        # (B, 256)


def prepare_params(params):
    """One-time layout plumbing (do once, outside the hot path):
    bf16 weights, 200->256 lane padding, and packing of the seven tiny
    per-feature vectors into a single (8, 512) f32 array."""
    w1 = jnp.zeros((PAD, H1), jnp.float32).at[:IN_FEATURES, :].set(params["w1"])
    w3 = jnp.zeros((H2, PAD), jnp.float32).at[:, :OUT_FEATURES].set(params["w3"])

    def row(v):
        v = v.reshape(1, -1)
        return jnp.zeros((1, PVEC_W), jnp.float32).at[:, : v.shape[1]].set(v)

    pvec = jnp.concatenate(
        [row(params["b1"]), row(params["g1"]), row(params["be1"]),
         row(params["b2"]), row(params["g2"]), row(params["be2"]),
         row(params["b3"]),                      # 200 valid cols, rest zero
         jnp.zeros((1, PVEC_W), jnp.float32)],   # pad to 8 sublanes
        axis=0)                                                  # (8, 512) f32

    return {
        "w1": w1.astype(jnp.bfloat16),                           # (256, 256)
        "w2": params["w2"].astype(jnp.bfloat16),                 # (256, 512)
        "w3": w3.astype(jnp.bfloat16),                           # (512, 256)
        "pvec": pvec,
    }


@jax.jit
def fine_text_embedding_forward(x, dp):
    """x: (B, 200) f32, dp: output of prepare_params. Returns (B, 200) f32."""
    B = x.shape[0]
    x_p = jnp.pad(x, ((0, 0), (0, PAD - IN_FEATURES))).astype(jnp.bfloat16)

    flops = 2 * B * (PAD * H1 + H1 * H2 + H2 * PAD)
    bytes_accessed = (
        x_p.size * 2
        + dp["w1"].size * 2 + dp["w2"].size * 2 + dp["w3"].size * 2
        + dp["pvec"].size * 4
        + B * PAD * 4)

    vmem = pl.BlockSpec(memory_space=pltpu.MemorySpace.VMEM)
    out = pl.pallas_call(
        _fine_text_embedding_kernel,
        out_shape=jax.ShapeDtypeStruct((B, PAD), jnp.float32),
        in_specs=[vmem] * 5,
        out_specs=vmem,
        cost_estimate=pl.CostEstimate(
            flops=flops, transcendentals=H1 + H2,
            bytes_accessed=bytes_accessed),
    )(x_p, dp["w1"], dp["w2"], dp["w3"], dp["pvec"])
    return out[:, :OUT_FEATURES]


def init_params(key):
    """Deterministic init mimicking PyTorch defaults:
    Linear weight/bias ~ U(-1/sqrt(fan_in), 1/sqrt(fan_in)); BN gamma=1, beta=0.
    Weights stored as [in_features, out_features] (f32 master copy)."""
    def linear(key, fan_in, fan_out):
        kw, kb = jax.random.split(key)
        bound = 1.0 / jnp.sqrt(float(fan_in))
        w = jax.random.uniform(kw, (fan_in, fan_out), jnp.float32, -bound, bound)
        b = jax.random.uniform(kb, (1, fan_out), jnp.float32, -bound, bound)
        return w, b

    k1, k2, k3 = jax.random.split(key, 3)
    w1, b1 = linear(k1, IN_FEATURES, H1)
    w2, b2 = linear(k2, H1, H2)
    w3, b3 = linear(k3, H2, OUT_FEATURES)
    return {
        "w1": w1, "b1": b1,
        "g1": jnp.ones((1, H1), jnp.float32), "be1": jnp.zeros((1, H1), jnp.float32),
        "w2": w2, "b2": b2,
        "g2": jnp.ones((1, H2), jnp.float32), "be2": jnp.zeros((1, H2), jnp.float32),
        "w3": w3, "b3": b3,
    }


def _reference_forward(x, p):
    """Plain-JAX f32 reference (PyTorch training-mode semantics)."""
    h1 = jnp.maximum(x @ p["w1"] + p["b1"], 0.0)
    m = h1.mean(0, keepdims=True)
    v = ((h1 - m) ** 2).mean(0, keepdims=True)
    h1 = (h1 - m) / jnp.sqrt(v + BN_EPS) * p["g1"] + p["be1"]
    h2 = jnp.maximum(h1 @ p["w2"] + p["b2"], 0.0)
    m = h2.mean(0, keepdims=True)
    v = ((h2 - m) ** 2).mean(0, keepdims=True)
    h2 = (h2 - m) / jnp.sqrt(v + BN_EPS) * p["g2"] + p["be2"]
    return h2 @ p["w3"] + p["b3"]


if __name__ == "__main__":
    key = jax.random.PRNGKey(0)
    k_params, k_x = jax.random.split(key)

    params = init_params(k_params)
    dev_params = prepare_params(params)            # one-time layout plumbing
    x = jax.random.normal(k_x, (8, IN_FEATURES), jnp.float32)   # batch=8, feat=200

    out = fine_text_embedding_forward(x, dev_params)
    out = jax.block_until_ready(out)

    ref = _reference_forward(x, params)
    assert out.shape == (8, OUT_FEATURES)
    # bf16 matmul operands -> looser tolerance than the pure-f32 version.
    assert jnp.allclose(out, ref, atol=3e-2, rtol=3e-2), (
        float(jnp.max(jnp.abs(out - ref))))

    print("KERNEL_OK")
</pallas_src>

<mosaic_0001>
module attributes {stable_mosaic.version = 11 : i64} {
  func.func @_fine_text_embedding_kernel(%arg0: memref<8x256xbf16, #tpu.memory_space<vmem>>, %arg1: memref<256x256xbf16, #tpu.memory_space<vmem>>, %arg2: memref<256x512xbf16, #tpu.memory_space<vmem>>, %arg3: memref<512x256xbf16, #tpu.memory_space<vmem>>, %arg4: memref<8x512xf32, #tpu.memory_space<vmem>>, %arg5: memref<8x256xf32, #tpu.memory_space<vmem>>) attributes {dimension_semantics = [], scalar_prefetch = 0 : i64, scratch_operands = 0 : i64, tpu.core_type = #tpu.core_type<tc>} {
    %c0 = arith.constant 0 : index
    %c0_0 = arith.constant 0 : index
    %0 = vector.load %arg4[%c0, %c0_0] : memref<8x512xf32, #tpu.memory_space<vmem>>, vector<8x512xf32>
    %1 = vector.extract_strided_slice %0 {offsets = [0, 0], sizes = [1, 256], strides = [1, 1]} : vector<8x512xf32> to vector<1x256xf32>
    %2 = vector.extract_strided_slice %0 {offsets = [1, 0], sizes = [1, 256], strides = [1, 1]} : vector<8x512xf32> to vector<1x256xf32>
    %3 = vector.extract_strided_slice %0 {offsets = [2, 0], sizes = [1, 256], strides = [1, 1]} : vector<8x512xf32> to vector<1x256xf32>
    %4 = vector.extract_strided_slice %0 {offsets = [3, 0], sizes = [1, 512], strides = [1, 1]} : vector<8x512xf32> to vector<1x512xf32>
    %5 = vector.extract_strided_slice %0 {offsets = [4, 0], sizes = [1, 512], strides = [1, 1]} : vector<8x512xf32> to vector<1x512xf32>
    %6 = vector.extract_strided_slice %0 {offsets = [5, 0], sizes = [1, 512], strides = [1, 1]} : vector<8x512xf32> to vector<1x512xf32>
    %7 = vector.extract_strided_slice %0 {offsets = [6, 0], sizes = [1, 256], strides = [1, 1]} : vector<8x512xf32> to vector<1x256xf32>
    %c0_1 = arith.constant 0 : index
    %c0_2 = arith.constant 0 : index
    %8 = vector.load %arg0[%c0_1, %c0_2] : memref<8x256xbf16, #tpu.memory_space<vmem>>, vector<8x256xbf16>
    %c0_3 = arith.constant 0 : index
    %c0_4 = arith.constant 0 : index
    %9 = vector.load %arg1[%c0_3, %c0_4] : memref<256x256xbf16, #tpu.memory_space<vmem>>, vector<256x256xbf16>
    %cst = arith.constant dense<0.000000e+00> : vector<8x256xf32>
    %10 = tpu.matmul %8, %9, %cst {dimension_numbers = #tpu.dot_dimension_numbers<[1], [0], [0], [1], [0, 0, 1, 1], [], []>} : vector<8x256xbf16>, vector<256x256xbf16>, vector<8x256xf32> -> vector<8x256xf32>
    %11 = vector.broadcast %1 : vector<1x256xf32> to vector<8x256xf32>
    %12 = arith.addf %10, %11 : vector<8x256xf32>
    %cst_5 = arith.constant 0.000000e+00 : f32
    %13 = vector.broadcast %cst_5 : f32 to vector<8x256xf32>
    %14 = arith.maximumf %12, %13 : vector<8x256xf32>
    %cst_6 = arith.constant dense<0.000000e+00> : vector<256xf32>
    %15 = vector.multi_reduction <add>, %14, %cst_6 [0] : vector<8x256xf32> to vector<256xf32>
    %16 = vector.shape_cast %15 : vector<256xf32> to vector<1x256xf32>
    %cst_7 = arith.constant 8.000000e+00 : f32
    %17 = vector.broadcast %cst_7 : f32 to vector<1x256xf32>
    %18 = arith.divf %16, %17 : vector<1x256xf32>
    %19 = arith.mulf %14, %14 : vector<8x256xf32>
    %cst_8 = arith.constant dense<0.000000e+00> : vector<256xf32>
    %20 = vector.multi_reduction <add>, %19, %cst_8 [0] : vector<8x256xf32> to vector<256xf32>
    %21 = vector.shape_cast %20 : vector<256xf32> to vector<1x256xf32>
    %cst_9 = arith.constant 8.000000e+00 : f32
    %22 = vector.broadcast %cst_9 : f32 to vector<1x256xf32>
    %23 = arith.divf %21, %22 : vector<1x256xf32>
    %24 = arith.mulf %18, %18 : vector<1x256xf32>
    %25 = arith.subf %23, %24 : vector<1x256xf32>
    %cst_10 = arith.constant 9.99999974E-6 : f32
    %26 = vector.broadcast %cst_10 : f32 to vector<1x256xf32>
    %27 = arith.addf %25, %26 : vector<1x256xf32>
    %28 = math.rsqrt %27 : vector<1x256xf32>
    %29 = arith.mulf %2, %28 : vector<1x256xf32>
    %30 = arith.mulf %18, %29 : vector<1x256xf32>
    %31 = arith.subf %3, %30 : vector<1x256xf32>
    %32 = vector.broadcast %29 : vector<1x256xf32> to vector<8x256xf32>
    %33 = arith.mulf %14, %32 : vector<8x256xf32>
    %34 = vector.broadcast %31 : vector<1x256xf32> to vector<8x256xf32>
    %35 = arith.addf %33, %34 : vector<8x256xf32>
    %36 = arith.truncf %35 : vector<8x256xf32> to vector<8x256xbf16>
    %c0_11 = arith.constant 0 : index
    %c0_12 = arith.constant 0 : index
    %37 = vector.load %arg2[%c0_11, %c0_12] : memref<256x512xbf16, #tpu.memory_space<vmem>>, vector<256x512xbf16>
    %cst_13 = arith.constant dense<0.000000e+00> : vector<8x512xf32>
    %38 = tpu.matmul %36, %37, %cst_13 {dimension_numbers = #tpu.dot_dimension_numbers<[1], [0], [0], [1], [0, 0, 1, 1], [], []>} : vector<8x256xbf16>, vector<256x512xbf16>, vector<8x512xf32> -> vector<8x512xf32>
    %39 = vector.broadcast %4 : vector<1x512xf32> to vector<8x512xf32>
    %40 = arith.addf %38, %39 : vector<8x512xf32>
    %cst_14 = arith.constant 0.000000e+00 : f32
    %41 = vector.broadcast %cst_14 : f32 to vector<8x512xf32>
    %42 = arith.maximumf %40, %41 : vector<8x512xf32>
    %cst_15 = arith.constant dense<0.000000e+00> : vector<512xf32>
    %43 = vector.multi_reduction <add>, %42, %cst_15 [0] : vector<8x512xf32> to vector<512xf32>
    %44 = vector.shape_cast %43 : vector<512xf32> to vector<1x512xf32>
    %cst_16 = arith.constant 8.000000e+00 : f32
    %45 = vector.broadcast %cst_16 : f32 to vector<1x512xf32>
    %46 = arith.divf %44, %45 : vector<1x512xf32>
    %47 = arith.mulf %42, %42 : vector<8x512xf32>
    %cst_17 = arith.constant dense<0.000000e+00> : vector<512xf32>
    %48 = vector.multi_reduction <add>, %47, %cst_17 [0] : vector<8x512xf32> to vector<512xf32>
    %49 = vector.shape_cast %48 : vector<512xf32> to vector<1x512xf32>
    %cst_18 = arith.constant 8.000000e+00 : f32
    %50 = vector.broadcast %cst_18 : f32 to vector<1x512xf32>
    %51 = arith.divf %49, %50 : vector<1x512xf32>
    %52 = arith.mulf %46, %46 : vector<1x512xf32>
    %53 = arith.subf %51, %52 : vector<1x512xf32>
    %cst_19 = arith.constant 9.99999974E-6 : f32
    %54 = vector.broadcast %cst_19 : f32 to vector<1x512xf32>
    %55 = arith.addf %53, %54 : vector<1x512xf32>
    %56 = math.rsqrt %55 : vector<1x512xf32>
    %57 = arith.mulf %5, %56 : vector<1x512xf32>
    %58 = arith.mulf %46, %57 : vector<1x512xf32>
    %59 = arith.subf %6, %58 : vector<1x512xf32>
    %60 = vector.broadcast %57 : vector<1x512xf32> to vector<8x512xf32>
    %61 = arith.mulf %42, %60 : vector<8x512xf32>
    %62 = vector.broadcast %59 : vector<1x512xf32> to vector<8x512xf32>
    %63 = arith.addf %61, %62 : vector<8x512xf32>
    %64 = arith.truncf %63 : vector<8x512xf32> to vector<8x512xbf16>
    %c0_20 = arith.constant 0 : index
    %c0_21 = arith.constant 0 : index
    %65 = vector.load %arg3[%c0_20, %c0_21] : memref<512x256xbf16, #tpu.memory_space<vmem>>, vector<512x256xbf16>
    %cst_22 = arith.constant dense<0.000000e+00> : vector<8x256xf32>
    %66 = tpu.matmul %64, %65, %cst_22 {dimension_numbers = #tpu.dot_dimension_numbers<[1], [0], [0], [1], [0, 0, 1, 1], [], []>} : vector<8x512xbf16>, vector<512x256xbf16>, vector<8x256xf32> -> vector<8x256xf32>
    %67 = vector.broadcast %7 : vector<1x256xf32> to vector<8x256xf32>
    %68 = arith.addf %66, %67 : vector<8x256xf32>
    %c0_23 = arith.constant 0 : index
    %c0_24 = arith.constant 0 : index
    %69 = vector.load %arg5[%c0_23, %c0_24] : memref<8x256xf32, #tpu.memory_space<vmem>>, vector<8x256xf32>
    tpu.vector_store %arg5[%c0_23, %c0_24], %68 {strides = array<i32>} : memref<8x256xf32, #tpu.memory_space<vmem>>, vector<8x256xf32>,
    return
  }
}

</mosaic_0001>

<bundles_post_ra>
// kernel: fine_text_embedding_forward.1
= control target key start
LH: loop header
LB: loop body
LE: loop exit
PB: predicated region body
PF: predicated region fallthrough
CT: control target
= control target key end

     0   :  { %10 = vsyncpa [#allocation3], 0  ;;  %s2206_s0 = inlined_call_operand.vmem [shape: bf16[8,256], index: 0, kind: input, shape index: {}]   ;;  %s2207_s1 = inlined_call_operand.hbm [shape: bf16[256,256], index: 1, kind: input, shape index: {}]   ;;  %s2208_s2 = inlined_call_operand.hbm [shape: bf16[256,512], index: 2, kind: input, shape index: {}]   ;;  %s2209_s3 = inlined_call_operand.hbm [shape: bf16[512,256], index: 3, kind: input, shape index: {}]   ;;  %s2210_s4 = inlined_call_operand.vmem [shape: f32[8,512], index: 4, kind: input, shape index: {}]   ;;  %s2211_s5 = inlined_call_operand.hbm [shape: f32[8,256], index: 5, kind: output, shape index: {}]  }
   0x1   :  { %11 = vsyncpa [#allocation6], 0 }
   0x2   :  { %12 = vsyncpa [#allocation4], 0  ;;  %s2036_s18 = smov [#allocation5]   ;;  %s1942_s22 = scalar_lea.hbm %s2208_s2, 8192 }
   0x3   :  { %s32_s19 = sshll.u32 %s2036_s18, 4  ;;  %p1943_p0 = scmp.ne.s32.totalorder %s2208_s2, %s1942_s22  ;;  %s33_s19 = int_to_ptr.vmem [resolvable:$true] %s32_s19 }
   0x4   :  { %p1946_p1 = scmp.lt.u32.totalorder %s1942_s22, %s2208_s2 }
   0x6   :  { %p1948_p2 = pnand %p1946_p1, %p1943_p0 }
   0x8   :  { %1951 = shalt.err (!%p1948_p2)
}
   0x9   :  { %s1952_s27 = scalar_lea.vmem %s33_s19, 8192  ;;  %p1957_p4 = scmp.lt.s32.totalorder %s33_s19, %s33_s19 }
   0xa   :  { %p1953_p3 = scmp.ne.s32.totalorder %s33_s19, %s1952_s27  ;;  %p1958_p5 = scmp.lt.s32.totalorder %s1952_s27, %s1952_s27 }
   0xc   :  { %p1959_p6 = por %p1958_p5, %p1957_p4 }
   0xe   :  { %p1960_p7 = pnand %p1959_p6, %p1953_p3 }
  0x10   :  { %1963 = shalt.err (!%p1960_p7)
}
  0x11   :  { %s2037_s28 = smov 256   ;;  %s2038_s29 = smov 16  }
  0x12   :  { %38 = dma.hbm_to_vmem [thread:$0]  %s2208_s2, 8192, %s33_s19, [#allocation6], %s2037_s28, %s2037_s28, %s2038_s29  }
  0x13   :  { %s2039_s7 = smov [#allocation2]   ;;  %s1964_s11 = scalar_lea.hbm %s2207_s1, 4096 }
  0x14   :  { %s20_s8 = sshll.u32 %s2039_s7, 4  ;;  %p1965_p8 = scmp.ne.s32.totalorder %s2207_s1, %s1964_s11  ;;  %s21_s8 = int_to_ptr.vmem [resolvable:$true] %s20_s8 }
  0x15   :  { %p1968_p9 = scmp.lt.u32.totalorder %s1964_s11, %s2207_s1 }
  0x17   :  { %p1970_p10 = pnand %p1968_p9, %p1965_p8 }
  0x19   :  { %1973 = shalt.err (!%p1970_p10)
}
  0x1a   :  { %s1974_s16 = scalar_lea.vmem %s21_s8, 4096  ;;  %p1979_p12 = scmp.lt.s32.totalorder %s21_s8, %s21_s8 }
  0x1b   :  { %p1975_p11 = scmp.ne.s32.totalorder %s21_s8, %s1974_s16  ;;  %p1980_p13 = scmp.lt.s32.totalorder %s1974_s16, %s1974_s16 }
  0x1d   :  { %p1981_p0 = por %p1980_p13, %p1979_p12 }
  0x1f   :  { %p1982_p1 = pnand %p1981_p0, %p1975_p11 }
  0x21   :  { %1985 = shalt.err (!%p1982_p1)
}
  0x22   :  { %s2040_s2 = smov 128   ;;  %s2041_s17 = smov 8  }
  0x23   :  { %26 = dma.hbm_to_vmem [thread:$0]  %s2207_s1, 4096, %s21_s8, [#allocation3], %s2040_s2, %s2040_s2, %s2041_s17  }
  0x24   :  { %s2042_s20 = smov [#allocation7]   ;;  %s1986_s24 = scalar_lea.hbm %s2209_s3, 8192 }
  0x25   :  { %s44_s21 = sshll.u32 %s2042_s20, 4  ;;  %p1987_p2 = scmp.ne.s32.totalorder %s2209_s3, %s1986_s24  ;;  %s45_s21 = int_to_ptr.vmem [resolvable:$true] %s44_s21 }
  0x26   :  { %p1990_p3 = scmp.lt.u32.totalorder %s1986_s24, %s2209_s3 }
  0x28   :  { %p1992_p4 = pnand %p1990_p3, %p1987_p2 }
  0x2a   :  { %1995 = shalt.err (!%p1992_p4)
}
  0x2b   :  { %s1996_s29 = scalar_lea.vmem %s45_s21, 8192  ;;  %p2001_p6 = scmp.lt.s32.totalorder %s45_s21, %s45_s21 }
  0x2c   :  { %p1997_p5 = scmp.ne.s32.totalorder %s45_s21, %s1996_s29  ;;  %p2002_p7 = scmp.lt.s32.totalorder %s1996_s29, %s1996_s29 }
  0x2e   :  { %p2003_p8 = por %p2002_p7, %p2001_p6 }
  0x30   :  { %p2004_p9 = pnand %p2003_p8, %p1997_p5 }
  0x32   :  { %2007 = shalt.err (!%p2004_p9)
}
  0x33   :  { %50 = dma.hbm_to_vmem [thread:$0]  %s2209_s3, 8192, %s45_s21, [#allocation6], %s2040_s2, %s2040_s2, %s2041_s17  }
  0x34   :  { %2030 = dma.done.wait [#allocation3], 4096  }
  0x35   :  { %2031 = vsyncadd [#allocation3], 4294963200 }
  0x36   :  { %2032 = dma.done.wait [#allocation6], 16384  }
  0x37   :  { %2033 = vsyncadd [#allocation6], 4294950912  ;;  %v1688_v0 = vld [vmem:[#allocation2 + $0x4] ss:$8 sps:$4 sm:$0xff]   ;;  %v1690_v1 = vld [vmem:[#allocation2] ss:$8 sps:$4 sm:$0xff]  }
  0x38   :  { %274 = vmatprep.subr.bf16.mxu0 %v1688_v0  ;;  %v1691_v2 = vld [vmem:[#allocation2 + $0x14] ss:$8 sps:$4 sm:$0xff]   ;;  %v1693_v3 = vld [vmem:[#allocation2 + $0x10] ss:$8 sps:$4 sm:$0xff]   ;;  %v1694_v4 = vld [vmem:[#allocation2 + $0x24] ss:$8 sps:$4 sm:$0xff]  }
  0x39   :  { %275 = vmatpush1.bf16.msra.mxu0 %v1690_v1  ;;  %v1696_v5 = vld [vmem:[#allocation2 + $0x20] ss:$8 sps:$4 sm:$0xff]   ;;  %v1697_v6 = vld [vmem:[#allocation2 + $0x34] ss:$8 sps:$4 sm:$0xff]   ;;  %v1699_v7 = vld [vmem:[#allocation2 + $0x30] ss:$8 sps:$4 sm:$0xff]  }
  0x3a   :  { %276 = vmatprep.subr.bf16.mxu0 %v1691_v2  ;;  %v1700_v8 = vld [vmem:[#allocation2 + $0x44] ss:$8 sps:$4 sm:$0xff]   ;;  %v1702_v9 = vld [vmem:[#allocation2 + $0x40] ss:$8 sps:$4 sm:$0xff]   ;;  %v1703_v10 = vld [vmem:[#allocation2 + $0x54] ss:$8 sps:$4 sm:$0xff]  }
  0x3b   :  { %v1705_v11 = vld [vmem:[#allocation2 + $0x50] ss:$8 sps:$4 sm:$0xff]   ;;  %v1706_v12 = vld [vmem:[#allocation2 + $0x64] ss:$8 sps:$4 sm:$0xff]   ;;  %v1708_v16 = vld [vmem:[#allocation2 + $0x60] ss:$8 sps:$4 sm:$0xff]  }
  0x3c   :  { %v66_v13 = vld [vmem:[%s2206_s0] sm:$0xff]  ;;  %v1712_v23 = vld [vmem:[#allocation2 + $0x84] ss:$8 sps:$4 sm:$0xff]   ;;  %v1714_v24 = vld [vmem:[#allocation2 + $0x80] ss:$8 sps:$4 sm:$0xff]  }
  0x3d   :  { %277 = vmatpush1.bf16.msra.mxu0 %v1693_v3  ;;  %v1513_v14 = vcombine.high %v66_v13, %v66_v13  ;;  %v1738_v15 = vld [vmem:[#allocation5 + $0x4] ss:$16 sps:$4 sm:$0xff]   ;;  %v1743_v18 = vld [vmem:[#allocation5] ss:$16 sps:$4 sm:$0xff]   ;;  %v1742_v40 = vld [vmem:[#allocation5 + $0xc] ss:$16 sps:$4 sm:$0xff]   ;;  %v1512_v42 = vcombine.low %v66_v13, %v66_v13 }
  0x3e   :  { %278 = vmatprep.subr.bf16.mxu0 %v1694_v4  ;;  %v1709_v17 = vld [vmem:[#allocation2 + $0x74] ss:$8 sps:$4 sm:$0xff]   ;;  %790 = vmatprep.subr.bf16.mxu1 %v1738_v15  ;;  %v1711_v20 = vld [vmem:[#allocation2 + $0x70] ss:$8 sps:$4 sm:$0xff]   ;;  %v1718_v28 = vld [vmem:[#allocation2 + $0xa4] ss:$8 sps:$4 sm:$0xff]  }
  0x3f   :  { %306 = vmatprep.mubr.bf16.mxu0 %v1513_v14  ;;  %v1744_v19 = vld [vmem:[#allocation5 + $0x24] ss:$16 sps:$4 sm:$0xff]   ;;  %791 = vmatpush1.bf16.msra.mxu1 %v1743_v18  ;;  %v1749_v21 = vld [vmem:[#allocation5 + $0x20] ss:$16 sps:$4 sm:$0xff]   ;;  %v1740_v41 = vld [vmem:[#allocation5 + $0x8] ss:$16 sps:$4 sm:$0xff]  }
  0x40   :  { %792 = vmatprep.subr.bf16.mxu1 %v1744_v19  ;;  %v1750_v22 = vld [vmem:[#allocation5 + $0x44] ss:$16 sps:$4 sm:$0xff]   ;;  %v1755_v25 = vld [vmem:[#allocation5 + $0x40] ss:$16 sps:$4 sm:$0xff]   ;;  %v1748_v43 = vld [vmem:[#allocation5 + $0x2c] ss:$16 sps:$4 sm:$0xff]  }
  0x41   :  { %279 = vmatpush1.bf16.msra.mxu0 %v1696_v5  ;;  %v1715_v26 = vld [vmem:[#allocation2 + $0x94] ss:$8 sps:$4 sm:$0xff]   ;;  %v1717_v27 = vld [vmem:[#allocation2 + $0x90] ss:$8 sps:$4 sm:$0xff]   ;;  %v1720_v29 = vld [vmem:[#allocation2 + $0xa0] ss:$8 sps:$4 sm:$0xff]  }
  0x42   :  { %280 = vmatprep.subr.bf16.mxu0 %v1697_v6  ;;  %v1721_v30 = vld [vmem:[#allocation2 + $0xb4] ss:$8 sps:$4 sm:$0xff]   ;;  %v1723_v31 = vld [vmem:[#allocation2 + $0xb0] ss:$8 sps:$4 sm:$0xff]   ;;  %v1724_v32 = vld [vmem:[#allocation2 + $0xc4] ss:$8 sps:$4 sm:$0xff]  }
  0x43   :  { %793 = vmatpush1.bf16.msra.mxu1 %v1749_v21  ;;  %v1726_v33 = vld [vmem:[#allocation2 + $0xc0] ss:$8 sps:$4 sm:$0xff]   ;;  %v1727_v34 = vld [vmem:[#allocation2 + $0xd4] ss:$8 sps:$4 sm:$0xff]   ;;  %v1729_v35 = vld [vmem:[#allocation2 + $0xd0] ss:$8 sps:$4 sm:$0xff]  }
  0x44   :  { %794 = vmatprep.subr.bf16.mxu1 %v1750_v22  ;;  %v1730_v36 = vld [vmem:[#allocation2 + $0xe4] ss:$8 sps:$4 sm:$0xff]   ;;  %v1732_v37 = vld [vmem:[#allocation2 + $0xe0] ss:$8 sps:$4 sm:$0xff]   ;;  %v1733_v38 = vld [vmem:[#allocation2 + $0xf4] ss:$8 sps:$4 sm:$0xff]  }
  0x45   :  { %281 = vmatpush1.bf16.msra.mxu0 %v1699_v7  ;;  %v1735_v39 = vld [vmem:[#allocation2 + $0xf0] ss:$8 sps:$4 sm:$0xff]   ;;  %v1754_v45 = vld [vmem:[#allocation5 + $0x4c] ss:$16 sps:$4 sm:$0xff]   ;;  %v1756_v47 = vld [vmem:[#allocation5 + $0x64] ss:$16 sps:$4 sm:$0xff]  }
  0x46   :  { %282 = vmatprep.subr.bf16.mxu0 %v1700_v8  ;;  %v1746_v44 = vld [vmem:[#allocation5 + $0x28] ss:$16 sps:$4 sm:$0xff]   ;;  %v1760_v48 = vld [vmem:[#allocation5 + $0x6c] ss:$16 sps:$4 sm:$0xff]   ;;  %v1761_v50 = vld [vmem:[#allocation5 + $0x60] ss:$16 sps:$4 sm:$0xff]  }
  0x47   :  { %795 = vmatpush1.bf16.msra.mxu1 %v1755_v25  ;;  %v1752_v46 = vld [vmem:[#allocation5 + $0x48] ss:$16 sps:$4 sm:$0xff]   ;;  %v1762_v51 = vld [vmem:[#allocation5 + $0x84] ss:$16 sps:$4 sm:$0xff]   ;;  %v1766_v52 = vld [vmem:[#allocation5 + $0x8c] ss:$16 sps:$4 sm:$0xff]  }
  0x48   :  { %v1758_v49 = vld [vmem:[#allocation5 + $0x68] ss:$16 sps:$4 sm:$0xff]   ;;  %796 = vmatprep.subr.bf16.mxu1 %v1756_v47  ;;  %v1767_v54 = vld [vmem:[#allocation5 + $0x80] ss:$16 sps:$4 sm:$0xff]   ;;  %v1768_v55 = vld [vmem:[#allocation5 + $0xa4] ss:$16 sps:$4 sm:$0xff]  }
  0x49   :  { %283 = vmatpush1.bf16.msra.mxu0 %v1702_v9  ;;  %v1764_v53 = vld [vmem:[#allocation5 + $0x88] ss:$16 sps:$4 sm:$0xff]   ;;  %v1772_v56 = vld [vmem:[#allocation5 + $0xac] ss:$16 sps:$4 sm:$0xff]   ;;  %v1773_v58 = vld [vmem:[#allocation5 + $0xa0] ss:$16 sps:$4 sm:$0xff]  }
  0x4a   :  { %284 = vmatprep.subr.bf16.mxu0 %v1703_v10  ;;  %v1770_v57 = vld [vmem:[#allocation5 + $0xa8] ss:$16 sps:$4 sm:$0xff]   ;;  %v1774_v59 = vld [vmem:[#allocation5 + $0xc4] ss:$16 sps:$4 sm:$0xff]   ;;  %v1778_v60 = vld [vmem:[#allocation5 + $0xcc] ss:$16 sps:$4 sm:$0xff]  }
  0x4b   :  { %797 = vmatpush1.bf16.msra.mxu1 %v1761_v50  ;;  %v1776_v61 = vld [vmem:[#allocation5 + $0xc8] ss:$16 sps:$4 sm:$0xff]   ;;  %v1779_v62 = vld [vmem:[#allocation5 + $0xc0] ss:$16 sps:$4 sm:$0xff]   ;;  %v1780_v63 = vld [vmem:[#allocation5 + $0xe4] ss:$16 sps:$4 sm:$0xff]  }
  0x4c   :  { %798 = vmatprep.subr.bf16.mxu1 %v1762_v51  ;;  %v1784_v0 = vld [vmem:[#allocation5 + $0xec] ss:$16 sps:$4 sm:$0xff]   ;;  %v1782_v1 = vld [vmem:[#allocation5 + $0xe8] ss:$16 sps:$4 sm:$0xff]   ;;  %v1785_v2 = vld [vmem:[#allocation5 + $0xe0] ss:$16 sps:$4 sm:$0xff]  }
  0x4d   :  { %285 = vmatpush1.bf16.msra.mxu0 %v1705_v11  ;;  %v1786_v3 = vld [vmem:[#allocation5 + $0x104] ss:$16 sps:$4 sm:$0xff]   ;;  %v1790_v4 = vld [vmem:[#allocation5 + $0x10c] ss:$16 sps:$4 sm:$0xff]   ;;  %v1788_v5 = vld [vmem:[#allocation5 + $0x108] ss:$16 sps:$4 sm:$0xff]  }
  0x4e   :  { %286 = vmatprep.subr.bf16.mxu0 %v1706_v12  ;;  %v1791_v6 = vld [vmem:[#allocation5 + $0x100] ss:$16 sps:$4 sm:$0xff]   ;;  %v1792_v7 = vld [vmem:[#allocation5 + $0x124] ss:$16 sps:$4 sm:$0xff]   ;;  %v1796_v8 = vld [vmem:[#allocation5 + $0x12c] ss:$16 sps:$4 sm:$0xff]  }
  0x4f   :  { %799 = vmatpush1.bf16.msra.mxu1 %v1767_v54  ;;  %v1794_v9 = vld [vmem:[#allocation5 + $0x128] ss:$16 sps:$4 sm:$0xff]   ;;  %v1797_v10 = vld [vmem:[#allocation5 + $0x120] ss:$16 sps:$4 sm:$0xff]   ;;  %v1798_v11 = vld [vmem:[#allocation5 + $0x144] ss:$16 sps:$4 sm:$0xff]  }
  0x50   :  { %800 = vmatprep.subr.bf16.mxu1 %v1768_v55  ;;  %v1802_v12 = vld [vmem:[#allocation5 + $0x14c] ss:$16 sps:$4 sm:$0xff]   ;;  %v1800_v13 = vld [vmem:[#allocation5 + $0x148] ss:$16 sps:$4 sm:$0xff]   ;;  %v1803_v14 = vld [vmem:[#allocation5 + $0x140] ss:$16 sps:$4 sm:$0xff]  }
  0x51   :  { %287 = vmatpush1.bf16.msra.mxu0 %v1708_v16  ;;  %v1804_v15 = vld [vmem:[#allocation5 + $0x164] ss:$16 sps:$4 sm:$0xff]   ;;  %v1808_v16 = vld [vmem:[#allocation5 + $0x16c] ss:$16 sps:$4 sm:$0xff]   ;;  %v1809_v18 = vld [vmem:[#allocation5 + $0x160] ss:$16 sps:$4 sm:$0xff]  }
  0x52   :  { %288 = vmatprep.subr.bf16.mxu0 %v1709_v17  ;;  %v1806_v17 = vld [vmem:[#allocation5 + $0x168] ss:$16 sps:$4 sm:$0xff]   ;;  %v1810_v19 = vld [vmem:[#allocation5 + $0x184] ss:$16 sps:$4 sm:$0xff]   ;;  %v1815_v22 = vld [vmem:[#allocation5 + $0x180] ss:$16 sps:$4 sm:$0xff]  }
  0x53   :  { %801 = vmatpush1.bf16.msra.mxu1 %v1773_v58  ;;  %v1812_v21 = vld [vmem:[#allocation5 + $0x188] ss:$16 sps:$4 sm:$0xff]  }
  0x54   :  { %802 = vmatprep.subr.bf16.mxu1 %v1774_v59  ;;  %v1818_v25 = vld [vmem:[#allocation5 + $0x1a8] ss:$16 sps:$4 sm:$0xff]  }
  0x55   :  { %289 = vmatpush1.bf16.msra.mxu0 %v1711_v20  ;;  %v1814_v20 = vld [vmem:[#allocation5 + $0x18c] ss:$16 sps:$4 sm:$0xff]  }
  0x56   :  { %290 = vmatprep.subr.bf16.mxu0 %v1712_v23  ;;  %v1816_v23 = vld [vmem:[#allocation5 + $0x1a4] ss:$16 sps:$4 sm:$0xff]  }
  0x57   :  { %803 = vmatpush1.bf16.msra.mxu1 %v1779_v62 }
  0x58   :  { %804 = vmatprep.subr.bf16.mxu1 %v1780_v63 }
  0x59   :  { %291 = vmatpush1.bf16.msra.mxu0 %v1714_v24  ;;  %v1820_v24 = vld [vmem:[#allocation5 + $0x1ac] ss:$16 sps:$4 sm:$0xff]  }
  0x5a   :  { %292 = vmatprep.subr.bf16.mxu0 %v1715_v26  ;;  %v1821_v26 = vld [vmem:[#allocation5 + $0x1a0] ss:$16 sps:$4 sm:$0xff]  }
  0x5b   :  { %805 = vmatpush1.bf16.msra.mxu1 %v1785_v2 }
  0x5c   :  { %806 = vmatprep.subr.bf16.mxu1 %v1786_v3 }
  0x5d   :  { %293 = vmatpush1.bf16.msra.mxu0 %v1717_v27  ;;  %v1822_v27 = vld [vmem:[#allocation5 + $0x1c4] ss:$16 sps:$4 sm:$0xff]  }
  0x5e   :  { %294 = vmatprep.subr.bf16.mxu0 %v1718_v28  ;;  %v1826_v28 = vld [vmem:[#allocation5 + $0x1cc] ss:$16 sps:$4 sm:$0xff]  }
  0x5f   :  { %807 = vmatpush1.bf16.msra.mxu1 %v1791_v6 }
  0x60   :  { %808 = vmatprep.subr.bf16.mxu1 %v1792_v7 }
  0x61   :  { %295 = vmatpush1.bf16.msra.mxu0 %v1720_v29  ;;  %v1824_v29 = vld [vmem:[#allocation5 + $0x1c8] ss:$16 sps:$4 sm:$0xff]  }
  0x62   :  { %296 = vmatprep.subr.bf16.mxu0 %v1721_v30  ;;  %v1827_v30 = vld [vmem:[#allocation5 + $0x1c0] ss:$16 sps:$4 sm:$0xff]  }
  0x63   :  { %809 = vmatpush1.bf16.msra.mxu1 %v1797_v10 }
  0x64   :  { %810 = vmatprep.subr.bf16.mxu1 %v1798_v11 }
  0x65   :  { %297 = vmatpush1.bf16.msra.mxu0 %v1723_v31  ;;  %v1828_v31 = vld [vmem:[#allocation5 + $0x1e4] ss:$16 sps:$4 sm:$0xff]  }
  0x66   :  { %298 = vmatprep.subr.bf16.mxu0 %v1724_v32  ;;  %v1832_v32 = vld [vmem:[#allocation5 + $0x1ec] ss:$16 sps:$4 sm:$0xff]  }
  0x67   :  { %811 = vmatpush1.bf16.msra.mxu1 %v1803_v14 }
  0x68   :  { %812 = vmatprep.subr.bf16.mxu1 %v1804_v15 }
  0x69   :  { %299 = vmatpush1.bf16.msra.mxu0 %v1726_v33  ;;  %v1830_v33 = vld [vmem:[#allocation5 + $0x1e8] ss:$16 sps:$4 sm:$0xff]  }
  0x6a   :  { %300 = vmatprep.subr.bf16.mxu0 %v1727_v34  ;;  %v1833_v34 = vld [vmem:[#allocation5 + $0x1e0] ss:$16 sps:$4 sm:$0xff]  }
  0x6b   :  { %813 = vmatpush1.bf16.msra.mxu1 %v1809_v18 }
  0x6c   :  { %814 = vmatprep.subr.bf16.mxu1 %v1810_v19 }
  0x6d   :  { %301 = vmatpush1.bf16.msra.mxu0 %v1729_v35  ;;  %v1836_v35 = vld [vmem:[#allocation7 + $0x4] ss:$8 sps:$4 sm:$0xff]  }
  0x6e   :  { %302 = vmatprep.subr.bf16.mxu0 %v1730_v36  ;;  %v99_v36 = vlaneseq }
  0x6f   :  { %815 = vmatpush1.bf16.msra.mxu1 %v1815_v22 }
  0x70   :  { %816 = vmatprep.subr.bf16.mxu1 %v1816_v23 }
  0x71   :  { %303 = vmatpush1.bf16.msra.mxu0 %v1732_v37  ;;  %v2113_v37 = vshrl.u32 %v99_v36, 7 }
  0x72   :  { %304 = vmatprep.subr.bf16.mxu0 %v1733_v38 }
  0x73   :  { %817 = vmatpush1.bf16.msra.mxu1 %v1821_v26  ;;  %v101_v38 = vsub.s32 0, %v2113_v37 }
  0x74   :  { %818 = vmatprep.subr.bf16.mxu1 %v1822_v27 }
  0x75   :  { %305 = vmatpush1.bf16.msra.mxu0 %v1735_v39  ;;  %v2119_v39 = vld [vmem:[%s2210_s4] sm:$0xff] }
  0x76   :  { %831 = vmatprep.subr.bf16.mxu0 %v1742_v40  ;;  %v2124_v40 = vld [vmem:[%s2210_s4 + $0x8] sm:$0xff] }
  0x77   :  { %819 = vmatpush1.bf16.msra.mxu1 %v1827_v30  ;;  %v380_v30 = vsub.s32 2, %v2113_v37 }
  0x78   :  { %307 = vmatmul.mubr.bf16.vlgmr.msra.gmra.mrb[0].mxu0 %v1512_v42  ;;  %820 = vmatprep.subr.bf16.mxu1 %v1828_v31  ;;  %v106_v42 = vrot.slane %v2124_v40, %v101_v38 }
  0x79   :  { %832 = vmatpush1.bf16.msra.mxu0 %v1740_v41  ;;  %v102_v41 = vrot.slane %v2119_v39, %v101_v38 }
  0x7a   :  { %833 = vmatprep.subr.bf16.mxu0 %v1748_v43 }
  0x7b   :  { %821 = vmatpush1.bf16.msra.mxu1 %v1833_v34 }
  0x7c   :  { %1412 = vmatprep.subr.bf16.mxu1 %v1836_v35 }
  0x7d   :  { %834 = vmatpush1.bf16.msra.mxu0 %v1746_v44 }
  0x7e   :  { %835 = vmatprep.subr.bf16.mxu0 %v1754_v45 }
  0x81   :  { %836 = vmatpush1.bf16.msra.mxu0 %v1752_v46 }
  0x82   :  { %837 = vmatprep.subr.bf16.mxu0 %v1760_v48 }
  0x85   :  { %838 = vmatpush1.bf16.msra.mxu0 %v1758_v49 }
  0x86   :  { %839 = vmatprep.subr.bf16.mxu0 %v1766_v52 }
  0x89   :  { %840 = vmatpush1.bf16.msra.mxu0 %v1764_v53 }
  0x8a   :  { %841 = vmatprep.subr.bf16.mxu0 %v1772_v56 }
  0x8d   :  { %842 = vmatpush1.bf16.msra.mxu0 %v1770_v57 }
  0x8e   :  { %843 = vmatprep.subr.bf16.mxu0 %v1778_v60 }
  0x91   :  { %844 = vmatpush1.bf16.msra.mxu0 %v1776_v61 }
  0x92   :  { %845 = vmatprep.subr.bf16.mxu0 %v1784_v0 }
  0x95   :  { %846 = vmatpush1.bf16.msra.mxu0 %v1782_v1 }
  0x96   :  { %847 = vmatprep.subr.bf16.mxu0 %v1790_v4 }
  0x99   :  { %848 = vmatpush1.bf16.msra.mxu0 %v1788_v5 }
  0x9a   :  { %849 = vmatprep.subr.bf16.mxu0 %v1796_v8 }
  0x9d   :  { %850 = vmatpush1.bf16.msra.mxu0 %v1794_v9 }
  0x9e   :  { %851 = vmatprep.subr.bf16.mxu0 %v1802_v12 }
  0xa1   :  { %852 = vmatpush1.bf16.msra.mxu0 %v1800_v13 }
  0xa2   :  { %853 = vmatprep.subr.bf16.mxu0 %v1808_v16 }
  0xa5   :  { %854 = vmatpush1.bf16.msra.mxu0 %v1806_v17 }
  0xa6   :  { %855 = vmatprep.subr.bf16.mxu0 %v1814_v20 }
  0xa9   :  { %856 = vmatpush1.bf16.msra.mxu0 %v1812_v21 }
  0xaa   :  { %857 = vmatprep.subr.bf16.mxu0 %v1820_v24 }
  0xad   :  { %858 = vmatpush1.bf16.msra.mxu0 %v1818_v25  ;;  %v370_v25 = vsub.s32 1, %v2113_v37 }
  0xae   :  { %859 = vmatprep.subr.bf16.mxu0 %v1826_v28 }
  0xb1   :  { %860 = vmatpush1.bf16.msra.mxu0 %v1824_v29 }
  0xb2   :  { %861 = vmatprep.subr.bf16.mxu0 %v1832_v32 }
  0xb5   :  { %862 = vmatpush1.bf16.msra.mxu0 %v1830_v33 }
 0x14b   :  { %v308_v43 = vpop.f32.mrb[0].mxu0 }
 0x14c   :  { %v309_v44 = vadd.f32 %v308_v43, %v102_v41  ;;  %v310_v45 = vpop.f32.mrb[1].mxu0 }
 0x14d   :  { %v311_v46 = vadd.f32 %v310_v45, %v106_v42  ;;  %v312_v47 = vpop.f32.mrb[2].mxu0 }
 0x14e   :  { %v315_v48 = vmax.f32 %v309_v44, 0.0  ;;  %v313_v49 = vpop.f32.mrb[3].mxu0  ;;  %v1834_v47 = vld [vmem:[#allocation7] ss:$8 sps:$4 sm:$0xff]  }
 0x14f   :  { %v316_v50 = vmax.f32 %v311_v46, 0.0 }
 0x150   :  { %v317_v51 = vrot.slane %v315_v48, 4  ;;  %v332_v52 = vmul.f32 %v315_v48, %v315_v48 }
 0x151   :  { %v323_v53 = vrot.slane %v316_v50, 4  ;;  %v333_v54 = vmul.f32 %v316_v50, %v316_v50 }
 0x152   :  { %v318_v55 = vadd.f32 %v317_v51, %v315_v48  ;;  %v334_v56 = vrot.slane %v332_v52, 4  ;;  %v1839_v51 = vld [vmem:[#allocation7 + $0x14] ss:$8 sps:$4 sm:$0xff]  }
 0x153   :  { %v324_v57 = vadd.f32 %v323_v53, %v316_v50  ;;  %v340_v58 = vrot.slane %v333_v54, 4  ;;  %v1842_v53 = vld [vmem:[#allocation7 + $0x24] ss:$8 sps:$4 sm:$0xff]  }
 0x154   :  { %v319_v59 = vrot.slane %v318_v55, 2  ;;  %v335_v60 = vadd.f32 %v334_v56, %v332_v52  ;;  %v1837_v52 = vld [vmem:[#allocation7 + $0x10] ss:$8 sps:$4 sm:$0xff]   ;;  %v1846_v56 = vld [vmem:[#allocation7 + $0x40] ss:$8 sps:$4 sm:$0xff]  }
 0x155   :  { %v325_v61 = vrot.slane %v324_v57, 2  ;;  %v341_v62 = vadd.f32 %v340_v58, %v333_v54  ;;  %v1840_v54 = vld [vmem:[#allocation7 + $0x20] ss:$8 sps:$4 sm:$0xff]   ;;  %v1849_v58 = vld [vmem:[#allocation7 + $0x50] ss:$8 sps:$4 sm:$0xff]  }
 0x156   :  { %v320_v63 = vadd.f32 %v319_v59, %v318_v55  ;;  %v336_v0 = vrot.slane %v335_v60, 2  ;;  %v1848_v55 = vld [vmem:[#allocation7 + $0x44] ss:$8 sps:$4 sm:$0xff]  }
 0x157   :  { %v326_v1 = vadd.f32 %v325_v61, %v324_v57  ;;  %v342_v2 = vrot.slane %v341_v62, 2  ;;  %v1851_v57 = vld [vmem:[#allocation7 + $0x54] ss:$8 sps:$4 sm:$0xff]   ;;  %v1854_v59 = vld [vmem:[#allocation7 + $0x64] ss:$8 sps:$4 sm:$0xff]  }
 0x158   :  { %v321_v3 = vrot.slane %v320_v63, 1  ;;  %v337_v4 = vadd.f32 %v336_v0, %v335_v60  ;;  %v1852_v60 = vld [vmem:[#allocation7 + $0x60] ss:$8 sps:$4 sm:$0xff]   ;;  %v1857_v61 = vld [vmem:[#allocation7 + $0x74] ss:$8 sps:$4 sm:$0xff]  }
 0x159   :  { %v343_v5 = vadd.f32 %v342_v2, %v341_v62  ;;  %v327_v6 = vrot.slane %v326_v1, 1  ;;  %v1855_v62 = vld [vmem:[#allocation7 + $0x70] ss:$8 sps:$4 sm:$0xff]   ;;  %v1858_v0 = vld [vmem:[#allocation7 + $0x80] ss:$8 sps:$4 sm:$0xff]  }
 0x15a   :  { %v322_v7 = vadd.f32 %v321_v3, %v320_v63  ;;  %v338_v8 = vrot.slane %v337_v4, 1  ;;  %v1860_v63 = vld [vmem:[#allocation7 + $0x84] ss:$8 sps:$4 sm:$0xff]   ;;  %v1861_v2 = vld [vmem:[#allocation7 + $0x90] ss:$8 sps:$4 sm:$0xff]  }
 0x15b   :  { %v344_v9 = vrot.slane %v343_v5, 1  ;;  %v328_v10 = vadd.f32 %v327_v6, %v326_v1  ;;  %v1863_v1 = vld [vmem:[#allocation7 + $0x94] ss:$8 sps:$4 sm:$0xff]   ;;  %v1866_v3 = vld [vmem:[#allocation7 + $0xa4] ss:$8 sps:$4 sm:$0xff]  }
 0x15c   :  { %v339_v11 = vadd.f32 %v338_v8, %v337_v4  ;;  %v330_v12 = vmul.f32 0.125, %v322_v7  ;;  %v1864_v4 = vld [vmem:[#allocation7 + $0xa0] ss:$8 sps:$4 sm:$0xff]   ;;  %v1867_v6 = vld [vmem:[#allocation7 + $0xb0] ss:$8 sps:$4 sm:$0xff]  }
 0x15d   :  { %v345_v13 = vadd.f32 %v344_v9, %v343_v5  ;;  %v331_v14 = vmul.f32 0.125, %v328_v10  ;;  %v1869_v5 = vld [vmem:[#allocation7 + $0xb4] ss:$8 sps:$4 sm:$0xff]   ;;  %v1872_v7 = vld [vmem:[#allocation7 + $0xc4] ss:$8 sps:$4 sm:$0xff]  }
 0x15e   :  { %v346_v15 = vmul.f32 0.125, %v339_v11  ;;  %v348_v16 = vmul.f32 %v330_v12, %v330_v12  ;;  %v1870_v8 = vld [vmem:[#allocation7 + $0xc0] ss:$8 sps:$4 sm:$0xff]   ;;  %v1875_v9 = vld [vmem:[#allocation7 + $0xd4] ss:$8 sps:$4 sm:$0xff]  }
 0x15f   :  { %v347_v17 = vmul.f32 0.125, %v345_v13  ;;  %v349_v18 = vmul.f32 %v331_v14, %v331_v14  ;;  %v1873_v10 = vld [vmem:[#allocation7 + $0xd0] ss:$8 sps:$4 sm:$0xff]   ;;  %v1878_v11 = vld [vmem:[#allocation7 + $0xe4] ss:$8 sps:$4 sm:$0xff]  }
 0x160   :  { %v350_v19 = vsub.f32 %v346_v15, %v348_v16  ;;  %v1879_v13 = vld [vmem:[#allocation7 + $0xf0] ss:$8 sps:$4 sm:$0xff]   ;;  %v1884_v15 = vld [vmem:[#allocation7 + $0x104] ss:$8 sps:$4 sm:$0xff]   ;;  %v456_v16 = vsub.s32 3, %v2113_v37 }
 0x161   :  { %v351_v20 = vsub.f32 %v347_v17, %v349_v18  ;;  %v2138_v17 = vld [vmem:[%s2210_s4 + $0x10] sm:$0xff]  ;;  %v2143_v18 = vld [vmem:[%s2210_s4 + $0x18] sm:$0xff]  ;;  %s2043_s4 = smov [#allocation8]  }
 0x162   :  { %v352_v21 = vadd.f32 1e-05, %v350_v19  ;;  %v457_v19 = vrot.slane %v2119_v39, %v456_v16  ;;  %s1502_s14 = sshll.u32 %s2043_s4, 4  ;;  %s1503_s14 = int_to_ptr.vmem [resolvable:$true] %s1502_s14 }
 0x163   :  { %v353_v22 = vadd.f32 1e-05, %v351_v20  ;;  %v465_v20 = vrot.slane %v2138_v17, %v456_v16  ;;  %s2008_s15 = scalar_lea.vmem %s1503_s14, 256  ;;  %p2013_p11 = scmp.lt.s32.totalorder %s1503_s14, %s1503_s14 }
 0x164   :  { %1930 = vrsqrt.f32 %v352_v21  ;;  %v461_v21 = vrot.slane %v2124_v40, %v456_v16  ;;  %p2009_p10 = scmp.ne.s32.totalorder %s1503_s14, %s2008_s15  ;;  %p2014_p12 = scmp.lt.s32.totalorder %s2008_s15, %s2008_s15 }
 0x165   :  { %1932 = vrsqrt.f32 %v353_v22  ;;  %v469_v22 = vrot.slane %v2143_v18, %v456_v16 }
 0x166   :  { %p2015_p13 = por %p2014_p12, %p2013_p11 }
 0x168   :  { %p2016_p0 = pnand %p2015_p13, %p2009_p10 }
 0x16e   :  { %v1931_v23 = vpop.eup %1930 }
 0x16f   :  { %v1933_v24 = vpop.eup %1932  ;;  %v356_v26 = vmul.f32 %v1931_v23, %v2119_v39 }
 0x170   :  { %v357_v27 = vmul.f32 %v1933_v24, %v2124_v40 }
 0x171   :  { %v358_v28 = vmul.f32 %v356_v26, %v330_v12  ;;  %v371_v32 = vrot.slane %v356_v26, %v370_v25  ;;  %v1876_v12 = vld [vmem:[#allocation7 + $0xe0] ss:$8 sps:$4 sm:$0xff]  }
 0x172   :  { %v359_v29 = vmul.f32 %v357_v27, %v331_v14  ;;  %v375_v34 = vrot.slane %v357_v27, %v370_v25  ;;  %v1881_v14 = vld [vmem:[#allocation7 + $0xf4] ss:$8 sps:$4 sm:$0xff]  }
 0x173   :  { %v362_v31 = vrot.slane %v358_v28, 7  ;;  %v376_v38 = vmul.f32 %v371_v32, %v315_v48  ;;  %v1845_v48 = vld [vmem:[#allocation7 + $0x34] ss:$8 sps:$4 sm:$0xff]  }
 0x174   :  { %v363_v33 = vrot.slane %v359_v29, 7  ;;  %v377_v42 = vmul.f32 %v375_v34, %v316_v50  ;;  %v1843_v50 = vld [vmem:[#allocation7 + $0x30] ss:$8 sps:$4 sm:$0xff]  }
 0x175   :  { %v366_v35 = vsub.f32 %v2119_v39, %v362_v31 }
 0x176   :  { %v367_v36 = vsub.f32 %v2124_v40, %v363_v33 }
 0x177   :  { %v381_v41 = vrot.slane %v366_v35, %v380_v30 }
 0x178   :  { %v385_v43 = vrot.slane %v367_v36, %v380_v30 }
 0x179   :  { %v386_v44 = vadd.f32 %v381_v41, %v376_v38 }
 0x17a   :  { %v387_v45 = vadd.f32 %v385_v43, %v377_v42 }
 0x17b   :  { %v388_v49 = vpack.c.bf16 %v386_v44, %v386_v44 }
 0x17c   :  { %v389_v46 = vpack.c.bf16 %v387_v45, %v387_v45 }
 0x17e   :  { %822 = vmatprep.mubr.bf16.mxu1 %v389_v46  ;;  %863 = vmatprep.mubr.bf16.mxu0 %v389_v46 }
 0x17f   :  { %823 = vmatmul.mubr.bf16.vlgmr.msra.gmra.mrb[0].mxu1 %v388_v49  ;;  %864 = vmatmul.mubr.bf16.vlgmr.msra.gmra.mrb[4].mxu0 %v388_v49 }
 0x180   :  { %1413 = vmatpush1.bf16.msra.mxu1 %v1834_v47 }
 0x181   :  { %1414 = vmatprep.subr.bf16.mxu1 %v1839_v51 }
 0x184   :  { %1415 = vmatpush1.bf16.msra.mxu1 %v1837_v52 }
 0x185   :  { %1416 = vmatprep.subr.bf16.mxu1 %v1842_v53 }
 0x188   :  { %1417 = vmatpush1.bf16.msra.mxu1 %v1840_v54 }
 0x189   :  { %1418 = vmatprep.subr.bf16.mxu1 %v1845_v48 }
 0x18c   :  { %1419 = vmatpush1.bf16.msra.mxu1 %v1843_v50 }
 0x18d   :  { %1420 = vmatprep.subr.bf16.mxu1 %v1848_v55 }
 0x190   :  { %1421 = vmatpush1.bf16.msra.mxu1 %v1846_v56 }
 0x191   :  { %1422 = vmatprep.subr.bf16.mxu1 %v1851_v57 }
 0x194   :  { %1423 = vmatpush1.bf16.msra.mxu1 %v1849_v58 }
 0x195   :  { %1424 = vmatprep.subr.bf16.mxu1 %v1854_v59 }
 0x198   :  { %1425 = vmatpush1.bf16.msra.mxu1 %v1852_v60 }
 0x199   :  { %1426 = vmatprep.subr.bf16.mxu1 %v1857_v61 }
 0x19c   :  { %1427 = vmatpush1.bf16.msra.mxu1 %v1855_v62 }
 0x19d   :  { %1428 = vmatprep.subr.bf16.mxu1 %v1860_v63 }
 0x1a0   :  { %1429 = vmatpush1.bf16.msra.mxu1 %v1858_v0 }
 0x1a1   :  { %1430 = vmatprep.subr.bf16.mxu1 %v1863_v1 }
 0x1a4   :  { %1431 = vmatpush1.bf16.msra.mxu1 %v1861_v2 }
 0x1a5   :  { %1432 = vmatprep.subr.bf16.mxu1 %v1866_v3 }
 0x1a8   :  { %1433 = vmatpush1.bf16.msra.mxu1 %v1864_v4 }
 0x1a9   :  { %1434 = vmatprep.subr.bf16.mxu1 %v1869_v5 }
 0x1ac   :  { %1435 = vmatpush1.bf16.msra.mxu1 %v1867_v6 }
 0x1ad   :  { %1436 = vmatprep.subr.bf16.mxu1 %v1872_v7 }
 0x1b0   :  { %1437 = vmatpush1.bf16.msra.mxu1 %v1870_v8 }
 0x1b1   :  { %1438 = vmatprep.subr.bf16.mxu1 %v1875_v9 }
 0x1b4   :  { %1439 = vmatpush1.bf16.msra.mxu1 %v1873_v10 }
 0x1b5   :  { %1440 = vmatprep.subr.bf16.mxu1 %v1878_v11 }
 0x1b8   :  { %1441 = vmatpush1.bf16.msra.mxu1 %v1876_v12 }
 0x1b9   :  { %1442 = vmatprep.subr.bf16.mxu1 %v1881_v14 }
 0x1bc   :  { %1443 = vmatpush1.bf16.msra.mxu1 %v1879_v13 }
 0x1bd   :  { %1453 = vmatprep.subr.bf16.mxu1 %v1884_v15 }
 0x252   :  { %v824_v23 = vpop.f32.mrb[0].mxu1  ;;  %v865_v24 = vpop.f32.mrb[4].mxu0 }
 0x253   :  { %v825_v25 = vadd.f32 %v824_v23, %v457_v19  ;;  %v866_v26 = vadd.f32 %v865_v24, %v465_v20  ;;  %v826_v27 = vpop.f32.mrb[1].mxu1  ;;  %v867_v28 = vpop.f32.mrb[5].mxu0 }
 0x254   :  { %v827_v29 = vadd.f32 %v826_v27, %v461_v21  ;;  %v868_v30 = vadd.f32 %v867_v28, %v469_v22  ;;  %v828_v31 = vpop.f32.mrb[2].mxu1  ;;  %v869_v32 = vpop.f32.mrb[6].mxu0 }
 0x255   :  { %v2149_v33 = vmax.f32 %v825_v25, 0.0  ;;  %v2151_v34 = vmax.f32 %v866_v26, 0.0  ;;  %v829_v35 = vpop.f32.mrb[3].mxu1  ;;  %v870_v36 = vpop.f32.mrb[7].mxu0 }
 0x256   :  { %v2153_v38 = vmax.f32 %v827_v29, 0.0  ;;  %v2155_v41 = vmax.f32 %v868_v30, 0.0 }
 0x257   :  { %v876_v42 = vrot.slane %v2149_v33, 4  ;;  %v904_v43 = vmul.f32 %v2149_v33, %v2149_v33  ;;  %v888_v44 = vrot.slane %v2151_v34, 4  ;;  %v906_v45 = vmul.f32 %v2151_v34, %v2151_v34 }
 0x258   :  { %v882_v46 = vrot.slane %v2153_v38, 4  ;;  %v905_v47 = vmul.f32 %v2153_v38, %v2153_v38  ;;  %v894_v49 = vrot.slane %v2155_v41, 4  ;;  %v907_v51 = vmul.f32 %v2155_v41, %v2155_v41 }
 0x259   :  { %v877_v52 = vadd.f32 %v876_v42, %v2149_v33  ;;  %v908_v53 = vrot.slane %v904_v43, 4  ;;  %v889_v54 = vadd.f32 %v888_v44, %v2151_v34  ;;  %v920_v48 = vrot.slane %v906_v45, 4 }
 0x25a   :  { %v883_v50 = vadd.f32 %v882_v46, %v2153_v38  ;;  %v914_v55 = vrot.slane %v905_v47, 4  ;;  %v895_v56 = vadd.f32 %v894_v49, %v2155_v41  ;;  %v926_v57 = vrot.slane %v907_v51, 4 }
 0x25b   :  { %v878_v58 = vrot.slane %v877_v52, 2  ;;  %v909_v59 = vadd.f32 %v908_v53, %v904_v43  ;;  %v890_v60 = vrot.slane %v889_v54, 2  ;;  %v921_v61 = vadd.f32 %v920_v48, %v906_v45 }
 0x25c   :  { %v884_v62 = vrot.slane %v883_v50, 2  ;;  %v915_v63 = vadd.f32 %v914_v55, %v905_v47  ;;  %v896_v0 = vrot.slane %v895_v56, 2  ;;  %v927_v1 = vadd.f32 %v926_v57, %v907_v51 }
 0x25d   :  { %v879_v2 = vadd.f32 %v878_v58, %v877_v52  ;;  %v910_v3 = vrot.slane %v909_v59, 2  ;;  %v891_v4 = vadd.f32 %v890_v60, %v889_v54  ;;  %v922_v5 = vrot.slane %v921_v61, 2 }
 0x25e   :  { %v885_v6 = vadd.f32 %v884_v62, %v883_v50  ;;  %v916_v7 = vrot.slane %v915_v63, 2  ;;  %v897_v8 = vadd.f32 %v896_v0, %v895_v56  ;;  %v928_v9 = vrot.slane %v927_v1, 2 }
 0x25f   :  { %v880_v10 = vrot.slane %v879_v2, 1  ;;  %v911_v11 = vadd.f32 %v910_v3, %v909_v59  ;;  %v892_v12 = vrot.slane %v891_v4, 1  ;;  %v923_v13 = vadd.f32 %v922_v5, %v921_v61 }
 0x260   :  { %v886_v14 = vrot.slane %v885_v6, 1  ;;  %v917_v15 = vadd.f32 %v916_v7, %v915_v63  ;;  %v898_v16 = vrot.slane %v897_v8, 1  ;;  %v929_v19 = vadd.f32 %v928_v9, %v927_v1 }
 0x261   :  { %v881_v20 = vadd.f32 %v880_v10, %v879_v2  ;;  %v912_v21 = vrot.slane %v911_v11, 1  ;;  %v893_v22 = vadd.f32 %v892_v12, %v891_v4  ;;  %v924_v23 = vrot.slane %v923_v13, 1 }
 0x262   :  { %v887_v24 = vadd.f32 %v886_v14, %v885_v6  ;;  %v918_v25 = vrot.slane %v917_v15, 1  ;;  %v899_v26 = vadd.f32 %v898_v16, %v897_v8  ;;  %v930_v27 = vrot.slane %v929_v19, 1 }
 0x263   :  { %v900_v28 = vmul.f32 0.125, %v881_v20  ;;  %v913_v29 = vadd.f32 %v912_v21, %v911_v11  ;;  %v902_v30 = vmul.f32 0.125, %v893_v22  ;;  %v925_v31 = vadd.f32 %v924_v23, %v923_v13 }
 0x264   :  { %v919_v32 = vadd.f32 %v918_v25, %v917_v15  ;;  %v903_v35 = vmul.f32 0.125, %v899_v26  ;;  %v931_v36 = vadd.f32 %v930_v27, %v929_v19  ;;  %v901_v42 = vmul.f32 0.125, %v887_v24 }
 0x265   :  { %v932_v43 = vmul.f32 0.125, %v913_v29  ;;  %v936_v44 = vmul.f32 %v900_v28, %v900_v28  ;;  %v934_v45 = vmul.f32 0.125, %v925_v31  ;;  %v938_v46 = vmul.f32 %v902_v30, %v902_v30 }
 0x266   :  { %v933_v47 = vmul.f32 0.125, %v919_v32  ;;  %v935_v49 = vmul.f32 0.125, %v931_v36  ;;  %v939_v51 = vmul.f32 %v903_v35, %v903_v35  ;;  %v937_v52 = vmul.f32 %v901_v42, %v901_v42  ;;  %v1882_v36 = vld [vmem:[#allocation7 + $0x100] ss:$8 sps:$4 sm:$0xff]  }
 0x267   :  { %v940_v53 = vsub.f32 %v932_v43, %v936_v44  ;;  %v942_v54 = vsub.f32 %v934_v45, %v938_v46  ;;  %v978_v60 = vsub.s32 4, %v2113_v37  ;;  %v998_v7 = vsub.s32 5, %v2113_v37  ;;  %v1888_v44 = vld [vmem:[#allocation7 + $0x120] ss:$8 sps:$4 sm:$0xff]   ;;  %v1891_v45 = vld [vmem:[#allocation7 + $0x130] ss:$8 sps:$4 sm:$0xff]  }
 0x268   :  { %v943_v48 = vsub.f32 %v935_v49, %v939_v51  ;;  %v941_v50 = vsub.f32 %v933_v47, %v937_v52  ;;  %v1896_v46 = vld [vmem:[#allocation7 + $0x144] ss:$8 sps:$4 sm:$0xff]   ;;  %v1894_v47 = vld [vmem:[#allocation7 + $0x140] ss:$8 sps:$4 sm:$0xff]   ;;  %v1899_v49 = vld [vmem:[#allocation7 + $0x154] ss:$8 sps:$4 sm:$0xff]  }
 0x269   :  { %v944_v55 = vadd.f32 1e-05, %v940_v53  ;;  %v946_v56 = vadd.f32 1e-05, %v942_v54  ;;  %v1897_v51 = vld [vmem:[#allocation7 + $0x150] ss:$8 sps:$4 sm:$0xff]  }
 0x26a   :  { %v947_v57 = vadd.f32 1e-05, %v943_v48  ;;  %v945_v58 = vadd.f32 1e-05, %v941_v50  ;;  %v1902_v52 = vld [vmem:[#allocation7 + $0x164] ss:$8 sps:$4 sm:$0xff]  }
 0x26b   :  { %1934 = vrsqrt.f32 %v944_v55  ;;  %v1900_v53 = vld [vmem:[#allocation7 + $0x160] ss:$8 sps:$4 sm:$0xff]   ;;  %v1905_v54 = vld [vmem:[#allocation7 + $0x174] ss:$8 sps:$4 sm:$0xff]   ;;  %v1903_v48 = vld [vmem:[#allocation7 + $0x170] ss:$8 sps:$4 sm:$0xff]  }
 0x26c   :  { %1936 = vrsqrt.f32 %v946_v56  ;;  %v1908_v50 = vld [vmem:[#allocation7 + $0x184] ss:$8 sps:$4 sm:$0xff]   ;;  %v1906_v55 = vld [vmem:[#allocation7 + $0x180] ss:$8 sps:$4 sm:$0xff]   ;;  %v1911_v56 = vld [vmem:[#allocation7 + $0x194] ss:$8 sps:$4 sm:$0xff]  }
 0x26d   :  { %1938 = vrsqrt.f32 %v947_v57  ;;  %v1909_v57 = vld [vmem:[#allocation7 + $0x190] ss:$8 sps:$4 sm:$0xff]  }
 0x26e   :  { %1940 = vrsqrt.f32 %v945_v58  ;;  %v1914_v58 = vld [vmem:[#allocation7 + $0x1a4] ss:$8 sps:$4 sm:$0xff]  }
 0x275   :  { %v1935_v59 = vpop.eup %1934 }
 0x276   :  { %v1937_v61 = vpop.eup %1936  ;;  %v952_v62 = vmul.f32 %v1935_v59, %v2119_v39  ;;  %v1912_v59 = vld [vmem:[#allocation7 + $0x1a0] ss:$8 sps:$4 sm:$0xff]  }
 0x277   :  { %v1939_v63 = vpop.eup %1938  ;;  %v954_v0 = vmul.f32 %v1937_v61, %v2138_v17  ;;  %v1915_v61 = vld [vmem:[#allocation7 + $0x1b0] ss:$8 sps:$4 sm:$0xff]  }
 0x278   :  { %v1941_v1 = vpop.eup %1940  ;;  %v955_v2 = vmul.f32 %v1939_v63, %v2143_v18  ;;  %v956_v3 = vmul.f32 %v952_v62, %v900_v28  ;;  %v979_v13 = vrot.slane %v952_v62, %v978_v60  ;;  %v1920_v62 = vld [vmem:[#allocation7 + $0x1c4] ss:$8 sps:$4 sm:$0xff]   ;;  %v1918_v63 = vld [vmem:[#allocation7 + $0x1c0] ss:$8 sps:$4 sm:$0xff]  }
 0x279   :  { %v958_v4 = vmul.f32 %v954_v0, %v902_v30  ;;  %v987_v5 = vrot.slane %v954_v0, %v978_v60  ;;  %v953_v6 = vmul.f32 %v1941_v1, %v2124_v40  ;;  %v1923_v0 = vld [vmem:[#allocation7 + $0x1d4] ss:$8 sps:$4 sm:$0xff]   ;;  %v1921_v1 = vld [vmem:[#allocation7 + $0x1d0] ss:$8 sps:$4 sm:$0xff]  }
 0x27a   :  { %v959_v8 = vmul.f32 %v955_v2, %v903_v35  ;;  %v964_v9 = vrot.slane %v956_v3, 7  ;;  %v991_v21 = vrot.slane %v955_v2, %v978_v60  ;;  %v992_v26 = vmul.f32 %v979_v13, %v2149_v33  ;;  %v1885_v33 = vld [vmem:[#allocation7 + $0x110] ss:$8 sps:$4 sm:$0xff]   ;;  %v1926_v2 = vld [vmem:[#allocation7 + $0x1e4] ss:$8 sps:$4 sm:$0xff]  }
 0x27b   :  { %v966_v10 = vrot.slane %v958_v4, 7  ;;  %v994_v11 = vmul.f32 %v987_v5, %v2151_v34  ;;  %v957_v12 = vmul.f32 %v953_v6, %v901_v42  ;;  %v983_v20 = vrot.slane %v953_v6, %v978_v60  ;;  %v1887_v42 = vld [vmem:[#allocation7 + $0x114] ss:$8 sps:$4 sm:$0xff]   ;;  %v1924_v3 = vld [vmem:[#allocation7 + $0x1e0] ss:$8 sps:$4 sm:$0xff]  }
 0x27c   :  { %v967_v14 = vrot.slane %v959_v8, 7  ;;  %v972_v15 = vsub.f32 %v2119_v39, %v964_v9  ;;  %v995_v29 = vmul.f32 %v991_v21, %v2155_v41  ;;  %v1893_v41 = vld [vmem:[#allocation7 + $0x134] ss:$8 sps:$4 sm:$0xff]   ;;  %v1927_v5 = vld [vmem:[#allocation7 + $0x1f0] ss:$8 sps:$4 sm:$0xff]  }
 0x27d   :  { %v974_v16 = vsub.f32 %v2138_v17, %v966_v10  ;;  %v965_v19 = vrot.slane %v957_v12, 7  ;;  %v993_v34 = vmul.f32 %v983_v20, %v2153_v38  ;;  %v1890_v38 = vld [vmem:[#allocation7 + $0x124] ss:$8 sps:$4 sm:$0xff]   ;;  %v1917_v60 = vld [vmem:[#allocation7 + $0x1b4] ss:$8 sps:$4 sm:$0xff]  }
 0x27e   :  { %v975_v22 = vsub.f32 %v2143_v18, %v967_v14  ;;  %v999_v23 = vrot.slane %v972_v15, %v998_v7  ;;  %v1929_v4 = vld [vmem:[#allocation7 + $0x1f4] ss:$8 sps:$4 sm:$0xff]  }
 0x27f   :  { %v1007_v24 = vrot.slane %v974_v16, %v998_v7  ;;  %v973_v25 = vsub.f32 %v2124_v40, %v965_v19 }
 0x280   :  { %v1011_v27 = vrot.slane %v975_v22, %v998_v7  ;;  %v1012_v17 = vadd.f32 %v999_v23, %v992_v26 }
 0x281   :  { %v1003_v28 = vrot.slane %v973_v25, %v998_v7  ;;  %v2187_v30 = vadd.f32 %v1007_v24, %v994_v11  ;;  %v1086_v7 = vsub.s32 6, %v2113_v37 }
 0x282   :  { %v1015_v32 = vadd.f32 %v1011_v27, %v995_v29  ;;  %v1016_v18 = vpack.c.bf16 %v1012_v17, %v1012_v17 }
 0x283   :  { %v1013_v31 = vadd.f32 %v1003_v28, %v993_v34  ;;  %v1018_v6 = vpack.c.bf16 %v2187_v30, %v2187_v30  ;;  %v1087_v8 = vrot.slane %v2119_v39, %v1086_v7  ;;  %v1091_v9 = vrot.slane %v2124_v40, %v1086_v7 }
 0x284   :  { %v1019_v43 = vpack.c.bf16 %v1015_v32, %v1015_v32 }
 0x285   :  { %v1017_v35 = vpack.c.bf16 %v1013_v31, %v1013_v31 }
 0x287   :  { %1444 = vmatprep.mubr.bf16.mxu1 %v1017_v35 }
 0x288   :  { %1445 = vmatmul.mubr.bf16.vlgmr.msra.gmra.mrb[4].mxu1 %v1016_v18 }
 0x289   :  { %1454 = vmatpush1.bf16.msra.mxu1 %v1882_v36  ;;  %1485 = vmatprep.mubr.bf16.mxu1 %v1019_v43 }
 0x28a   :  { %1455 = vmatprep.subr.bf16.mxu1 %v1887_v42 }
 0x28d   :  { %1456 = vmatpush1.bf16.msra.mxu1 %v1885_v33 }
 0x28e   :  { %1457 = vmatprep.subr.bf16.mxu1 %v1890_v38 }
 0x291   :  { %1458 = vmatpush1.bf16.msra.mxu1 %v1888_v44 }
 0x292   :  { %1459 = vmatprep.subr.bf16.mxu1 %v1893_v41 }
 0x295   :  { %1460 = vmatpush1.bf16.msra.mxu1 %v1891_v45 }
 0x296   :  { %1461 = vmatprep.subr.bf16.mxu1 %v1896_v46 }
 0x299   :  { %1462 = vmatpush1.bf16.msra.mxu1 %v1894_v47 }
 0x29a   :  { %1463 = vmatprep.subr.bf16.mxu1 %v1899_v49 }
 0x29d   :  { %1464 = vmatpush1.bf16.msra.mxu1 %v1897_v51 }
 0x29e   :  { %1465 = vmatprep.subr.bf16.mxu1 %v1902_v52 }
 0x2a1   :  { %1466 = vmatpush1.bf16.msra.mxu1 %v1900_v53 }
 0x2a2   :  { %1467 = vmatprep.subr.bf16.mxu1 %v1905_v54 }
 0x2a5   :  { %1468 = vmatpush1.bf16.msra.mxu1 %v1903_v48 }
 0x2a6   :  { %1469 = vmatprep.subr.bf16.mxu1 %v1908_v50 }
 0x2a9   :  { %1470 = vmatpush1.bf16.msra.mxu1 %v1906_v55 }
 0x2aa   :  { %1471 = vmatprep.subr.bf16.mxu1 %v1911_v56 }
 0x2ad   :  { %1472 = vmatpush1.bf16.msra.mxu1 %v1909_v57 }
 0x2ae   :  { %1473 = vmatprep.subr.bf16.mxu1 %v1914_v58 }
 0x2b1   :  { %1474 = vmatpush1.bf16.msra.mxu1 %v1912_v59 }
 0x2b2   :  { %1475 = vmatprep.subr.bf16.mxu1 %v1917_v60 }
 0x2b5   :  { %1476 = vmatpush1.bf16.msra.mxu1 %v1915_v61 }
 0x2b6   :  { %1477 = vmatprep.subr.bf16.mxu1 %v1920_v62 }
 0x2b9   :  { %1478 = vmatpush1.bf16.msra.mxu1 %v1918_v63 }
 0x2ba   :  { %1479 = vmatprep.subr.bf16.mxu1 %v1923_v0 }
 0x2bd   :  { %1480 = vmatpush1.bf16.msra.mxu1 %v1921_v1 }
 0x2be   :  { %1481 = vmatprep.subr.bf16.mxu1 %v1926_v2 }
 0x2c1   :  { %1482 = vmatpush1.bf16.msra.mxu1 %v1924_v3 }
 0x2c2   :  { %1483 = vmatprep.subr.bf16.mxu1 %v1929_v4 }
 0x2c5   :  { %1484 = vmatpush1.bf16.msra.mxu1 %v1927_v5 }
 0x2c8   :  { %1486 = vmatmul.mubr.bf16.vlgmr.msra.gmra.mrb[4].mxu1 %v1018_v6 }
 0x39b   :  { %v1487_v10 = vpop.f32.mrb[4].mxu1 }
 0x39c   :  { %v1674_v11 = vadd.f32 %v1487_v10, %v1087_v8  ;;  %v1489_v12 = vpop.f32.mrb[5].mxu1 }
 0x39d   :  { %v1675_v13 = vadd.f32 %v1489_v12, %v1091_v9  ;;  %v1491_v14 = vpop.f32.mrb[6].mxu1 }
 0x39e   :  { %1494 = vst [vmem:[#allocation8] sm:$0xff] %v1674_v11  ;;  %v1492_v15 = vpop.f32.mrb[7].mxu1 }
 0x39f   :  { %1495 = vst [vmem:[#allocation8 + $0x8] sm:$0xff] %v1675_v13 }
 0x3a0   :  { %2019 = shalt.err (!%p2016_p0)
}
 0x3a1   :  { %s2020_s17 = scalar_lea.hbm %s2211_s5, 256 }
 0x3a2   :  { %p2021_p1 = scmp.ne.s32.totalorder %s2211_s5, %s2020_s17  ;;  %p2024_p2 = scmp.lt.u32.totalorder %s2020_s17, %s2211_s5 }
 0x3a4   :  { %p2026_p3 = pnand %p2024_p2, %p2021_p1 }
 0x3a6   :  { %2029 = shalt.err (!%p2026_p3)
}
 0x3a7   :  { %1505 = dma.vmem_to_hbm [thread:$0]  %s1503_s14, 256, %s2211_s5, [#allocation4]  }
 0x3a8   :  { %2034 = dma.done.wait [#allocation4], 256  }
 0x3a9   :  { %2035 = vsyncadd [#allocation4], 4294967040 }
 0x3aa   :  { %1509 = vsyncpa [#allocation3], 1 }
 0x3ab   :  { %1510 = vsyncpa [#allocation6], 1 }
 0x3ac   :  { %1511 = vsyncpa [#allocation4], 1 }

</bundles_post_ra>
